<compile_context>
chip_gen: v7x
topology: tpu7x:2x2x1
jax: 0.10.0
libtpu: 0.0.40
codegen_flags: <defaults>
</compile_context>

<pallas_src>
import functools

import jax
import jax.numpy as jnp
from jax.experimental import pallas as pl
from jax.experimental.pallas import tpu as pltpu


def _club_kernel(x_ref, y_ref, ysum_ref, ysq_ref,
                 w1_ref, b1_ref, w2_ref, b2_ref,
                 out_ref, *, n_rows, tile_n, y_dim):
    # ---- fused first layer (p_mu | p_logvar): one MXU dot -------------------
    h = jnp.dot(x_ref[...], w1_ref[...],
                preferred_element_type=jnp.float32) + b1_ref[...]
    h = jnp.maximum(h, 0.0)                                  # [T, 2*h2]

    # ---- fused second layer via block-diagonal weight -> (mu | pre_logvar) --
    o2 = jnp.dot(h, w2_ref[...],
                 preferred_element_type=jnp.float32) + b2_ref[...]  # [T, 2*y_dim]
    mu = o2[:, :y_dim]
    logvar = jnp.tanh(o2[:, y_dim:])

    inv_var = jnp.exp(-logvar)          # EUP exp gives the reciprocal for free
    half_inv = 0.5 * inv_var

    y = y_ref[...].astype(jnp.float32)
    pos_sq = (mu - y) ** 2                                   # (mu_i - y_i)^2

    # mean_j (y_j - mu_i)^2 = E[y^2] - 2*mu_i*E[y] + mu_i^2   (O(N*D) form)
    inv_n = 1.0 / float(n_rows)
    neg_msq = (ysq_ref[...] - 2.0 * mu * ysum_ref[...]) * inv_n + mu * mu

    # positive - negative = (neg_msq - pos_sq) * inv_var / 2
    contrib = (neg_msq - pos_sq) * half_inv                  # [T, y_dim]

    if n_rows % tile_n != 0:
        # mask rows past the true sample count on the last (partial) tile
        row = (pl.program_id(0) * tile_n
               + jax.lax.broadcasted_iota(jnp.int32, contrib.shape, 0))
        contrib = jnp.where(row < n_rows, contrib, 0.0)

    partial = jnp.sum(contrib, axis=0, keepdims=True)        # [1, y_dim]
    out_ref[...] = partial[None].astype(out_ref.dtype)       # [1, 1, y_dim]


def club_forward(x, y, params, *, tile_n=256):
    """CLUB forward. params: w1m,b1m,w2m,b2m,w1v,b1v,w2v,b2v ([in,out] weights,
    [1,out] biases)."""
    n, x_dim = x.shape
    _, y_dim = y.shape
    h2 = params["w1m"].shape[1]

    # --- pack weights: fused first layer, block-diagonal second layer --------
    w1 = jnp.concatenate([params["w1m"], params["w1v"]], axis=1)      # [x_dim, 2*h2]
    b1 = jnp.concatenate([params["b1m"], params["b1v"]], axis=1)      # [1, 2*h2]
    zeros = jnp.zeros((h2, y_dim), jnp.float32)
    w2 = jnp.concatenate(
        [jnp.concatenate([params["w2m"], zeros], axis=1),
         jnp.concatenate([zeros, params["w2v"]], axis=1)], axis=0)    # [2*h2, 2*y_dim]
    b2 = jnp.concatenate([params["b2m"], params["b2v"]], axis=1)      # [1, 2*y_dim]

    # --- O(N*D) sufficient statistics of y for the pairwise term -------------
    yf = y.astype(jnp.float32)
    ysum = jnp.sum(yf, axis=0, keepdims=True)                         # [1, y_dim]
    ysq = jnp.sum(yf * yf, axis=0, keepdims=True)                     # [1, y_dim]

    tile_n = min(tile_n, n)
    num_tiles = pl.cdiv(n, tile_n)

    kernel = functools.partial(_club_kernel, n_rows=n, tile_n=tile_n, y_dim=y_dim)

    def row_spec(d):
        return pl.BlockSpec((tile_n, d), lambda i: (i, 0))

    def full_spec(a):
        return pl.BlockSpec(a.shape, lambda i: (0, 0))

    flops = 2 * n * (x_dim * 2 * h2 + 2 * h2 * 2 * y_dim) + 12 * n * y_dim
    bytes_accessed = (x.size * x.dtype.itemsize + y.size * y.dtype.itemsize
                      + 4 * (w1.size + b1.size + w2.size + b2.size
                             + ysum.size + ysq.size + num_tiles * y_dim))

    partials = pl.pallas_call(
        kernel,
        out_shape=jax.ShapeDtypeStruct((num_tiles, 1, y_dim), jnp.float32),
        grid=(num_tiles,),
        in_specs=[
            row_spec(x_dim),                 # x   (tiled over rows)
            row_spec(y_dim),                 # y   (tiled over rows)
            full_spec(ysum),                 # sum_j y      (resident)
            full_spec(ysq),                  # sum_j y^2    (resident)
            full_spec(w1), full_spec(b1),    # fused layer 1 (resident)
            full_spec(w2), full_spec(b2),    # fused layer 2 (resident)
        ],
        out_specs=pl.BlockSpec((1, 1, y_dim), lambda i: (i, 0, 0)),
        compiler_params=pltpu.CompilerParams(
            dimension_semantics=("parallel",)),
        cost_estimate=pl.CostEstimate(
            flops=flops, transcendentals=2 * n * y_dim,
            bytes_accessed=bytes_accessed),
    )(x, y, ysum, ysq, w1, b1, w2, b2)

    # tiny final reduction over per-tile partial feature sums
    return jnp.sum(partials) / jnp.float32(n)


def init_params(key, x_dim, y_dim, hidden_size):
    h2 = hidden_size // 2
    ks = jax.random.split(key, 8)

    def linear(kw, kb, fan_in, fan_out):
        # deterministic uniform(-1/sqrt(fan_in), 1/sqrt(fan_in)), PyTorch-style
        bound = 1.0 / jnp.sqrt(jnp.float32(fan_in))
        w = jax.random.uniform(kw, (fan_in, fan_out), jnp.float32, -bound, bound)
        b = jax.random.uniform(kb, (1, fan_out), jnp.float32, -bound, bound)
        return w, b

    w1m, b1m = linear(ks[0], ks[1], x_dim, h2)
    w2m, b2m = linear(ks[2], ks[3], h2, y_dim)
    w1v, b1v = linear(ks[4], ks[5], x_dim, h2)
    w2v, b2v = linear(ks[6], ks[7], h2, y_dim)
    return dict(w1m=w1m, b1m=b1m, w2m=w2m, b2m=b2m,
                w1v=w1v, b1v=b1v, w2v=w2v, b2v=b2v)


def club_forward_ref(x, y, p):
    """Pure-JAX reference mirroring the PyTorch forward."""
    h = jnp.maximum(x @ p["w1m"] + p["b1m"], 0.0)
    mu = h @ p["w2m"] + p["b2m"]
    h = jnp.maximum(x @ p["w1v"] + p["b1v"], 0.0)
    logvar = jnp.tanh(h @ p["w2v"] + p["b2v"])
    positive = -((mu - y) ** 2) / 2.0 / jnp.exp(logvar)
    negative = (-jnp.mean((y[None, :, :] - mu[:, None, :]) ** 2, axis=1)
                / 2.0 / jnp.exp(logvar))
    return jnp.mean(positive.sum(-1) - negative.sum(-1))


if __name__ == "__main__":
    N, x_dim, y_dim, hidden_size = 256, 16, 16, 32

    key = jax.random.PRNGKey(0)
    kx, ky, kp = jax.random.split(key, 3)
    x = jax.random.normal(kx, (N, x_dim), jnp.float32)
    y = jax.random.normal(ky, (N, y_dim), jnp.float32)
    params = init_params(kp, x_dim, y_dim, hidden_size)

    club = jax.jit(functools.partial(club_forward, tile_n=128))
    mi = club(x, y, params)
    jax.block_until_ready(mi)

    mi_ref = club_forward_ref(x, y, params)
    assert jnp.allclose(mi, mi_ref, atol=1e-3, rtol=1e-3), (mi, mi_ref)

    print("KERNEL_OK")
</pallas_src>

<mosaic_0001>
module attributes {stable_mosaic.version = 11 : i64} {
  func.func @_club_kernel(%arg0: i32, %arg1: memref<128x16xf32, #tpu.memory_space<vmem>>, %arg2: memref<128x16xf32, #tpu.memory_space<vmem>>, %arg3: memref<1x16xf32, #tpu.memory_space<vmem>>, %arg4: memref<1x16xf32, #tpu.memory_space<vmem>>, %arg5: memref<16x32xf32, #tpu.memory_space<vmem>>, %arg6: memref<1x32xf32, #tpu.memory_space<vmem>>, %arg7: memref<32x32xf32, #tpu.memory_space<vmem>>, %arg8: memref<1x32xf32, #tpu.memory_space<vmem>>, %arg9: memref<1x1x16xf32, #tpu.memory_space<vmem>>) attributes {dimension_semantics = [#tpu.dimension_semantics<parallel>], iteration_bounds = array<i64: 2>, scalar_prefetch = 0 : i64, scratch_operands = 0 : i64, tpu.core_type = #tpu.core_type<tc>, window_params = [{transform_indices = @transform_0, window_bounds = array<i64: 128, 16>}, {transform_indices = @transform_1, window_bounds = array<i64: 128, 16>}, {pipeline_mode = #tpu.pipeline_mode<synchronous>, transform_indices = @transform_2, window_bounds = array<i64: 1, 16>}, {pipeline_mode = #tpu.pipeline_mode<synchronous>, transform_indices = @transform_3, window_bounds = array<i64: 1, 16>}, {pipeline_mode = #tpu.pipeline_mode<synchronous>, transform_indices = @transform_4, window_bounds = array<i64: 16, 32>}, {pipeline_mode = #tpu.pipeline_mode<synchronous>, transform_indices = @transform_5, window_bounds = array<i64: 1, 32>}, {pipeline_mode = #tpu.pipeline_mode<synchronous>, transform_indices = @transform_6, window_bounds = array<i64: 32, 32>}, {pipeline_mode = #tpu.pipeline_mode<synchronous>, transform_indices = @transform_7, window_bounds = array<i64: 1, 32>}, {transform_indices = @transform_8, window_bounds = array<i64: 1, 1, 16>}]} {
    %c0 = arith.constant 0 : index
    %c0_0 = arith.constant 0 : index
    %0 = vector.load %arg1[%c0, %c0_0] : memref<128x16xf32, #tpu.memory_space<vmem>>, vector<128x16xf32>
    %c0_1 = arith.constant 0 : index
    %c0_2 = arith.constant 0 : index
    %1 = vector.load %arg5[%c0_1, %c0_2] : memref<16x32xf32, #tpu.memory_space<vmem>>, vector<16x32xf32>
    %cst = arith.constant dense<0.000000e+00> : vector<128x32xf32>
    %2 = tpu.matmul %0, %1, %cst {dimension_numbers = #tpu.dot_dimension_numbers<[1], [0], [0], [1], [0, 0, 1, 1], [], []>} : vector<128x16xf32>, vector<16x32xf32>, vector<128x32xf32> -> vector<128x32xf32>
    %c0_3 = arith.constant 0 : index
    %c0_4 = arith.constant 0 : index
    %3 = vector.load %arg6[%c0_3, %c0_4] : memref<1x32xf32, #tpu.memory_space<vmem>>, vector<1x32xf32>
    %4 = vector.broadcast %3 : vector<1x32xf32> to vector<128x32xf32>
    %5 = arith.addf %2, %4 : vector<128x32xf32>
    %cst_5 = arith.constant 0.000000e+00 : f32
    %6 = vector.broadcast %cst_5 : f32 to vector<128x32xf32>
    %7 = arith.maximumf %5, %6 : vector<128x32xf32>
    %c0_6 = arith.constant 0 : index
    %c0_7 = arith.constant 0 : index
    %8 = vector.load %arg7[%c0_6, %c0_7] : memref<32x32xf32, #tpu.memory_space<vmem>>, vector<32x32xf32>
    %cst_8 = arith.constant dense<0.000000e+00> : vector<128x32xf32>
    %9 = tpu.matmul %7, %8, %cst_8 {dimension_numbers = #tpu.dot_dimension_numbers<[1], [0], [0], [1], [0, 0, 1, 1], [], []>} : vector<128x32xf32>, vector<32x32xf32>, vector<128x32xf32> -> vector<128x32xf32>
    %c0_9 = arith.constant 0 : index
    %c0_10 = arith.constant 0 : index
    %10 = vector.load %arg8[%c0_9, %c0_10] : memref<1x32xf32, #tpu.memory_space<vmem>>, vector<1x32xf32>
    %11 = vector.broadcast %10 : vector<1x32xf32> to vector<128x32xf32>
    %12 = arith.addf %9, %11 : vector<128x32xf32>
    %13 = vector.extract_strided_slice %12 {offsets = [0, 0], sizes = [128, 16], strides = [1, 1]} : vector<128x32xf32> to vector<128x16xf32>
    %14 = vector.extract_strided_slice %12 {offsets = [0, 16], sizes = [128, 16], strides = [1, 1]} : vector<128x32xf32> to vector<128x16xf32>
    %15 = math.tanh %14 : vector<128x16xf32>
    %cst_11 = arith.constant 0.000000e+00 : f32
    %16 = vector.broadcast %cst_11 : f32 to vector<128x16xf32>
    %17 = arith.subf %16, %15 : vector<128x16xf32>
    %18 = math.exp %17 : vector<128x16xf32>
    %cst_12 = arith.constant 5.000000e-01 : f32
    %19 = vector.broadcast %cst_12 : f32 to vector<128x16xf32>
    %20 = arith.mulf %19, %18 : vector<128x16xf32>
    %c0_13 = arith.constant 0 : index
    %c0_14 = arith.constant 0 : index
    %21 = vector.load %arg2[%c0_13, %c0_14] : memref<128x16xf32, #tpu.memory_space<vmem>>, vector<128x16xf32>
    %22 = arith.subf %13, %21 : vector<128x16xf32>
    %23 = arith.mulf %22, %22 : vector<128x16xf32>
    %c0_15 = arith.constant 0 : index
    %c0_16 = arith.constant 0 : index
    %24 = vector.load %arg4[%c0_15, %c0_16] : memref<1x16xf32, #tpu.memory_space<vmem>>, vector<1x16xf32>
    %cst_17 = arith.constant 2.000000e+00 : f32
    %25 = vector.broadcast %cst_17 : f32 to vector<128x16xf32>
    %26 = arith.mulf %25, %13 : vector<128x16xf32>
    %c0_18 = arith.constant 0 : index
    %c0_19 = arith.constant 0 : index
    %27 = vector.load %arg3[%c0_18, %c0_19] : memref<1x16xf32, #tpu.memory_space<vmem>>, vector<1x16xf32>
    %28 = vector.broadcast %27 : vector<1x16xf32> to vector<128x16xf32>
    %29 = arith.mulf %26, %28 : vector<128x16xf32>
    %30 = vector.broadcast %24 : vector<1x16xf32> to vector<128x16xf32>
    %31 = arith.subf %30, %29 : vector<128x16xf32>
    %cst_20 = arith.constant 3.906250e-03 : f32
    %32 = vector.broadcast %cst_20 : f32 to vector<128x16xf32>
    %33 = arith.mulf %31, %32 : vector<128x16xf32>
    %34 = arith.mulf %13, %13 : vector<128x16xf32>
    %35 = arith.addf %33, %34 : vector<128x16xf32>
    %36 = arith.subf %35, %23 : vector<128x16xf32>
    %37 = arith.mulf %36, %20 : vector<128x16xf32>
    %cst_21 = arith.constant dense<0.000000e+00> : vector<16xf32>
    %38 = vector.multi_reduction <add>, %37, %cst_21 [0] : vector<128x16xf32> to vector<16xf32>
    %39 = vector.shape_cast %38 : vector<16xf32> to vector<1x16xf32>
    %40 = vector.shape_cast %39 : vector<1x16xf32> to vector<1x1x16xf32>
    %c0_22 = arith.constant 0 : index
    %c0_23 = arith.constant 0 : index
    %c0_24 = arith.constant 0 : index
    %41 = vector.load %arg9[%c0_22, %c0_23, %c0_24] : memref<1x1x16xf32, #tpu.memory_space<vmem>>, vector<1x1x16xf32>
    tpu.vector_store %arg9[%c0_22, %c0_23, %c0_24], %40 {strides = array<i32>} : memref<1x1x16xf32, #tpu.memory_space<vmem>>, vector<1x1x16xf32>,
    return
  }
  func.func @transform_0(%arg0: i32) -> (i32, i32) {
    %c0_i32 = arith.constant 0 : i32
    %c0_i32_0 = arith.constant 0 : i32
    return %arg0, %c0_i32 : i32, i32
  }
  func.func @transform_1(%arg0: i32) -> (i32, i32) {
    %c0_i32 = arith.constant 0 : i32
    %c0_i32_0 = arith.constant 0 : i32
    return %arg0, %c0_i32 : i32, i32
  }
  func.func @transform_2(%arg0: i32) -> (i32, i32) {
    %c0_i32 = arith.constant 0 : i32
    %c0_i32_0 = arith.constant 0 : i32
    %c0_i32_1 = arith.constant 0 : i32
    return %c0_i32, %c0_i32_0 : i32, i32
  }
  func.func @transform_3(%arg0: i32) -> (i32, i32) {
    %c0_i32 = arith.constant 0 : i32
    %c0_i32_0 = arith.constant 0 : i32
    %c0_i32_1 = arith.constant 0 : i32
    return %c0_i32, %c0_i32_0 : i32, i32
  }
  func.func @transform_4(%arg0: i32) -> (i32, i32) {
    %c0_i32 = arith.constant 0 : i32
    %c0_i32_0 = arith.constant 0 : i32
    %c0_i32_1 = arith.constant 0 : i32
    return %c0_i32, %c0_i32_0 : i32, i32
  }
  func.func @transform_5(%arg0: i32) -> (i32, i32) {
    %c0_i32 = arith.constant 0 : i32
    %c0_i32_0 = arith.constant 0 : i32
    %c0_i32_1 = arith.constant 0 : i32
    return %c0_i32, %c0_i32_0 : i32, i32
  }
  func.func @transform_6(%arg0: i32) -> (i32, i32) {
    %c0_i32 = arith.constant 0 : i32
    %c0_i32_0 = arith.constant 0 : i32
    %c0_i32_1 = arith.constant 0 : i32
    return %c0_i32, %c0_i32_0 : i32, i32
  }
  func.func @transform_7(%arg0: i32) -> (i32, i32) {
    %c0_i32 = arith.constant 0 : i32
    %c0_i32_0 = arith.constant 0 : i32
    %c0_i32_1 = arith.constant 0 : i32
    return %c0_i32, %c0_i32_0 : i32, i32
  }
  func.func @transform_8(%arg0: i32) -> (i32, i32, i32) {
    %c0_i32 = arith.constant 0 : i32
    %c0_i32_0 = arith.constant 0 : i32
    %c0_i32_1 = arith.constant 0 : i32
    return %arg0, %c0_i32, %c0_i32_0 : i32, i32, i32
  }
}

</mosaic_0001>

<bundles_post_ra>
// kernel: club_forward.1
= control target key start
LH: loop header
LB: loop body
LE: loop exit
PB: predicated region body
PF: predicated region fallthrough
CT: control target
= control target key end

     0   :  { %s1482_s27 = smov 0   ;;  %s1947_s0 = inlined_call_operand.vmem [shape: f32[256,16], index: 0, kind: input, shape index: {}]   ;;  %s1948_s1 = inlined_call_operand.vmem [shape: f32[256,16], index: 1, kind: input, shape index: {}]   ;;  %s1949_s2 = inlined_call_operand.vmem [shape: f32[1,16], index: 2, kind: input, shape index: {}]   ;;  %s1950_s3 = inlined_call_operand.vmem [shape: f32[1,16], index: 3, kind: input, shape index: {}]   ;;  %s1951_s4 = inlined_call_operand.vmem [shape: f32[16,32], index: 4, kind: input, shape index: {}]   ;;  %s1952_s5 = inlined_call_operand.vmem [shape: f32[1,32], index: 5, kind: input, shape index: {}]   ;;  %s1953_s6 = inlined_call_operand.vmem [shape: f32[32,32], index: 6, kind: input, shape index: {}]   ;;  %s1954_s7 = inlined_call_operand.vmem [shape: f32[1,32], index: 7, kind: input, shape index: {}]   ;;  %s1955_s8 = inlined_call_operand.vmem [shape: f32[2,1,16], index: 8, kind: output, shape index: {}]  }
   0x1 LB: > { %s1488_s28 = sadd.s32 4294967295, %s1434_s27   ;;  %p1202_p0 = scmp.ge.s32.totalorder %s1434_s27, 1  ;;  %s1434_s27 = sphi %s1482_s27, %s18_s27  }
   0x2   : > { %p274_p1 = scmp.lt.s32.totalorder %s1434_s27, 3 }
   0x4   : > { %p275_p2 = pnand %p1202_p0, %p274_p1 }
   0x5   : > { %v342_v0 = vld [vmem:[%s1951_s4] sm:$0xff] (!%p275_p2)  ;;  %v343_v1 = vld [vmem:[%s1951_s4 + $0x8] sm:$0xff] (!%p275_p2)  ;;  %s1203_s11 = sshll.u32 (!%p275_p2), %s1488_s28, 4  ;;  %vm351_vm0 = vcmask (!%p275_p2), 130048   ;;  %v563_v22 = vld [vmem:[%s1953_s6 + $0x10] sm:$0xff] (!%p275_p2)  ;;  %vm572_vm1 = vcmask (!%p275_p2), 261120  }
   0x6   : > { %278 = sbr.rel (%p275_p2) target bundleno = 646 (0x286), region = 52  ;;  %v561_v2 = vld [vmem:[%s1953_s6] sm:$0xff] (!%p275_p2)  ;;  %v1343_v3 = vpack.c.bf16 (!%p275_p2), %v343_v1, %v342_v0  ;;  %p312_p3 = scmp.lt.s32.totalorder (!%p275_p2), %s1203_s11, 31  ;;  %v562_v4 = vld [vmem:[%s1953_s6 + $0x8] sm:$0xff] (!%p275_p2)  ;;  %v564_v23 = vld [vmem:[%s1953_s6 + $0x18] sm:$0xff] (!%p275_p2)  ;;  %vm1137_vm2 = vcmask (!%p275_p2), 122880  }
   0x7   : > { %v1347_v5 = vpack.c.bf16 (!%p275_p2), %v562_v4, %v561_v2  ;;  %v1351_v24 = vpack.c.bf16 (!%p275_p2), %v564_v23, %v563_v22  ;;  %v1207_v25 = vld [vmem:[%s1952_s5] ss:$0 sm:$0xff] (!%p275_p2)  ;;  %s1436_s15 = smov (!%p275_p2), 112   ;;  %p323_p4 = scmp.lt.s32.totalorder (!%p275_p2), %s1488_s28, 1 }
   0x8   : > { %1344 = vmatprep.subr.bf16.mxu0 (!%p275_p2), %v1343_v3  ;;  %v1596_v23 = vld [vmem:[%s1950_s3] ss:$0 sm:$0xff] (!%p275_p2) }
   0x9   : > { %1346 = vmatpush3.bf16.msra.mxu0 (!%p275_p2), %v1343_v3  ;;  %1348 = vmatprep.subr.bf16.mxu1 (!%p275_p2), %v1347_v5 }
   0xa   : > { %1350 = vmatpush3.bf16.msra.mxu1 (!%p275_p2), %v1347_v5 }
   0xb   : > { %1352 = vmatprep.subr.bf16.mxu1 (!%p275_p2), %v1351_v24 }
   0xd   : > { %s1957_s11 = smov (!%p312_p3, %s1203_s11), 31  ;;  %s1959_s28 = smov (!%p323_p4, %s1488_s28), 1 }
   0xe   : > { %s1204_s16 = sshll.u32 %s1957_s11, 3  ;;  %1354 = vmatpush3.bf16.msra.mxu1 %v1351_v24  ;;  %s325_s18 = scalar_lea.vmem %s1955_s8, %s1959_s28 }
   0xf   : > { %s1513_s19 = scalar_lea.vmem %s1947_s0, %s1204_s16  ;;  %s1577_s30 = scalar_lea.vmem %s1948_s1, %s1204_s16 }
  0x10   : > { %v326_v6 = vld [vmem:[%s1513_s19] sm:$0xff]  ;;  %v327_v7 = vld [vmem:[%s1513_s19 + $0x8] sm:$0xff]  ;;  %v328_v8 = vld [vmem:[%s1513_s19 + $0x10] sm:$0xff] }
  0x11   : > { %1287 = vmatprep.mubr.msk.f32.mxu0 %vm351_vm0, %v326_v6  ;;  %v329_v9 = vld [vmem:[%s1513_s19 + $0x18] sm:$0xff]  ;;  %v330_v10 = vld [vmem:[%s1513_s19 + $0x20] sm:$0xff]  ;;  %v331_v11 = vld [vmem:[%s1513_s19 + $0x28] sm:$0xff] }
  0x12   : > { %1288 = vmatmul.mubr.msk.f32.vlgmr.msra.gmra.mrb[0].mxu0 %vm351_vm0, %v327_v7  ;;  %v332_v12 = vld [vmem:[%s1513_s19 + $0x30] sm:$0xff]  ;;  %v333_v13 = vld [vmem:[%s1513_s19 + $0x38] sm:$0xff]  ;;  %v334_v14 = vld [vmem:[%s1513_s19 + $0x40] sm:$0xff] }
  0x13   : > { %1290 = vmatprep.mubr.msk.f32.mxu0 %vm351_vm0, %v328_v8  ;;  %v335_v15 = vld [vmem:[%s1513_s19 + $0x48] sm:$0xff]  ;;  %v336_v16 = vld [vmem:[%s1513_s19 + $0x50] sm:$0xff]  ;;  %v337_v17 = vld [vmem:[%s1513_s19 + $0x58] sm:$0xff] }
  0x14   : > { %v338_v18 = vld [vmem:[%s1513_s19 + $0x60] sm:$0xff]  ;;  %v339_v19 = vld [vmem:[%s1513_s19 + $0x68] sm:$0xff]  ;;  %v340_v20 = vld [vmem:[%s1513_s19 + $0x70] sm:$0xff] }
  0x15   : > { %v341_v21 = vld [vmem:[%s1513_s19 + $0x78] sm:$0xff] }
  0x16   : > { %1291 = vmatmul.mubr.msk.f32.gmra.mrb[2].mxu0 %vm351_vm0, %v329_v9  ;;  %v849_v24 = vld [vmem:[%s1577_s30 + $0x18] sm:$0xff] }
  0x17   : > { %1293 = vmatprep.mubr.msk.f32.mxu0 %vm351_vm0, %v330_v10  ;;  %v1582_v10 = vld [vmem:[%s1954_s7] ss:$0 sm:$0xff] }
  0x1a   : > { %1294 = vmatmul.mubr.msk.f32.gmra.mrb[4].mxu0 %vm351_vm0, %v331_v11 }
  0x1b   : > { %1296 = vmatprep.mubr.msk.f32.mxu0 %vm351_vm0, %v332_v12  ;;  %v847_v12 = vld [vmem:[%s1577_s30 + $0x8] sm:$0xff] }
  0x1e   : > { %1297 = vmatmul.mubr.msk.f32.gmra.mrb[6].mxu0 %vm351_vm0, %v333_v13 }
  0x1f   : > { %1299 = vmatprep.mubr.msk.f32.mxu0 %vm351_vm0, %v334_v14 }
  0x22   : > { %1300 = vmatmul.mubr.msk.f32.gmra.mrb[8].mxu0 %vm351_vm0, %v335_v15  ;;  %v846_v15 = vld [vmem:[%s1577_s30] sm:$0xff] }
  0x23   : > { %1302 = vmatprep.mubr.msk.f32.mxu0 %vm351_vm0, %v336_v16 }
  0x26   : > { %1303 = vmatmul.mubr.msk.f32.gmra.mrb[10].mxu0 %vm351_vm0, %v337_v17  ;;  %v1591_v17 = vld [vmem:[%s1949_s2] ss:$0 sm:$0xff] }
  0x27   : > { %1305 = vmatprep.mubr.msk.f32.mxu0 %vm351_vm0, %v338_v18 }
  0x2a   : > { %1306 = vmatmul.mubr.msk.f32.gmra.mrb[12].mxu0 %vm351_vm0, %v339_v19 }
  0x2b   : > { %1308 = vmatprep.mubr.msk.f32.mxu0 %vm351_vm0, %v340_v20 }
  0x2e   : > { %1309 = vmatmul.mubr.msk.f32.gmra.mrb[14].mxu0 %vm351_vm0, %v341_v21 }
  0xe5   : > { %v1289_v26 = vpop.f32.mrb[0].mxu0 }
  0xe6   : > { %v472_v27 = vadd.f32 %v1289_v26, %v1207_v25  ;;  %v466_v28 = vpop.f32.mrb[1].mxu0 }
  0xe7   : > { %v467_v29 = vadd.f32 %v1207_v25, %v466_v28 }
  0xe8   : > { %v546_v32 = vmax.f32 %v472_v27, 0.0  ;;  %v848_v27 = vld [vmem:[%s1577_s30 + $0x10] sm:$0xff] }
  0xe9   : > { %v545_v30 = vmax.f32 %v467_v29, 0.0  ;;  %v1292_v31 = vpop.f32.mrb[2].mxu0 }
  0xea   : > { %v482_v33 = vadd.f32 %v1292_v31, %v1207_v25  ;;  %v476_v34 = vpop.f32.mrb[3].mxu0 }
  0xeb   : > { %v477_v35 = vadd.f32 %v1207_v25, %v476_v34  ;;  %1319 = vmatprep.mubr.msk.f32.mxu1 %vm572_vm1, %v545_v30 }
  0xec   : > { %1320 = vmatmul.mubr.msk.f32.vlgmr.msra.gmra.mrb[0].mxu1 %vm572_vm1, %v546_v32  ;;  %v548_v38 = vmax.f32 %v482_v33, 0.0 }
  0xed   : > { %v547_v36 = vmax.f32 %v477_v35, 0.0  ;;  %v1295_v37 = vpop.f32.mrb[4].mxu0 }
  0xee   : > { %v492_v39 = vadd.f32 %v1295_v37, %v1207_v25  ;;  %v486_v40 = vpop.f32.mrb[5].mxu0 }
  0xef   : > { %v487_v41 = vadd.f32 %v1207_v25, %v486_v40  ;;  %1322 = vmatprep.mubr.msk.f32.mxu1 %vm572_vm1, %v547_v36 }
  0xf0   : > { %v550_v42 = vmax.f32 %v492_v39, 0.0  ;;  %1323 = vmatmul.mubr.msk.f32.gmra.mrb[2].mxu1 %vm572_vm1, %v548_v38 }
  0xf1   : > { %v549_v43 = vmax.f32 %v487_v41, 0.0  ;;  %v1298_v44 = vpop.f32.mrb[6].mxu0 }
  0xf2   : > { %v502_v45 = vadd.f32 %v1298_v44, %v1207_v25  ;;  %v496_v46 = vpop.f32.mrb[7].mxu0 }
  0xf3   : > { %v497_v47 = vadd.f32 %v1207_v25, %v496_v46  ;;  %1325 = vmatprep.mubr.msk.f32.mxu1 %vm572_vm1, %v549_v43 }
  0xf4   : > { %v552_v48 = vmax.f32 %v502_v45, 0.0  ;;  %1326 = vmatmul.mubr.msk.f32.gmra.mrb[4].mxu1 %vm572_vm1, %v550_v42 }
  0xf5   : > { %v551_v49 = vmax.f32 %v497_v47, 0.0  ;;  %v1301_v50 = vpop.f32.mrb[8].mxu0 }
  0xf6   : > { %v512_v51 = vadd.f32 %v1301_v50, %v1207_v25  ;;  %v506_v52 = vpop.f32.mrb[9].mxu0 }
  0xf7   : > { %v507_v53 = vadd.f32 %v1207_v25, %v506_v52  ;;  %1328 = vmatprep.mubr.msk.f32.mxu1 %vm572_vm1, %v551_v49 }
  0xf8   : > { %v554_v54 = vmax.f32 %v512_v51, 0.0  ;;  %1329 = vmatmul.mubr.msk.f32.gmra.mrb[6].mxu1 %vm572_vm1, %v552_v48 }
  0xf9   : > { %v553_v55 = vmax.f32 %v507_v53, 0.0  ;;  %v1304_v56 = vpop.f32.mrb[10].mxu0 }
  0xfa   : > { %v522_v57 = vadd.f32 %v1304_v56, %v1207_v25  ;;  %v516_v58 = vpop.f32.mrb[11].mxu0 }
  0xfb   : > { %v517_v59 = vadd.f32 %v1207_v25, %v516_v58  ;;  %1331 = vmatprep.mubr.msk.f32.mxu1 %vm572_vm1, %v553_v55 }
  0xfc   : > { %v556_v60 = vmax.f32 %v522_v57, 0.0  ;;  %1332 = vmatmul.mubr.msk.f32.gmra.mrb[8].mxu1 %vm572_vm1, %v554_v54 }
  0xfd   : > { %v555_v61 = vmax.f32 %v517_v59, 0.0  ;;  %v1307_v62 = vpop.f32.mrb[12].mxu0 }
  0xfe   : > { %v532_v63 = vadd.f32 %v1307_v62, %v1207_v25  ;;  %v526_v0 = vpop.f32.mrb[13].mxu0 }
  0xff   : > { %v527_v1 = vadd.f32 %v1207_v25, %v526_v0  ;;  %1334 = vmatprep.mubr.msk.f32.mxu1 %vm572_vm1, %v555_v61 }
 0x100   : > { %v558_v2 = vmax.f32 %v532_v63, 0.0  ;;  %1335 = vmatmul.mubr.msk.f32.gmra.mrb[10].mxu1 %vm572_vm1, %v556_v60 }
 0x101   : > { %v557_v3 = vmax.f32 %v527_v1, 0.0  ;;  %v1310_v4 = vpop.f32.mrb[14].mxu0 }
 0x102   : > { %v542_v5 = vadd.f32 %v1310_v4, %v1207_v25  ;;  %v536_v6 = vpop.f32.mrb[15].mxu0 }
 0x103   : > { %v537_v7 = vadd.f32 %v1207_v25, %v536_v6  ;;  %1337 = vmatprep.mubr.msk.f32.mxu1 %vm572_vm1, %v557_v3 }
 0x104   : > { %v560_v8 = vmax.f32 %v542_v5, 0.0  ;;  %1338 = vmatmul.mubr.msk.f32.gmra.mrb[12].mxu1 %vm572_vm1, %v558_v2  ;;  %v850_v2 = vld [vmem:[%s1577_s30 + $0x20] sm:$0xff] }
 0x105   : > { %v559_v9 = vmax.f32 %v537_v7, 0.0 }
 0x107   : > { %1340 = vmatprep.mubr.msk.f32.mxu1 %vm572_vm1, %v559_v9 }
 0x108   : > { %1341 = vmatmul.mubr.msk.f32.gmra.mrb[14].mxu1 %vm572_vm1, %v560_v8 }
 0x1bf   : > { %v1321_v11 = vpop.f32.mrb[0].mxu1 }
 0x1c0   : > { %v693_v13 = vadd.f32 %v1321_v11, %v1582_v10  ;;  %v687_v14 = vpop.f32.mrb[1].mxu1 }
 0x1c1   : > { %v688_v16 = vadd.f32 %v1582_v10, %v687_v14 }
 0x1c2   : > { %1364 = vtanh.f32 %v693_v13  ;;  %v896_v18 = vmul.f32 2.0, %v693_v13  ;;  %v863_v19 = vsub.f32 %v693_v13, %v847_v12  ;;  %v973_v31 = vmul.f32 %v693_v13, %v693_v13 }
 0x1c3   : > { %v895_v20 = vmul.f32 2.0, %v688_v16  ;;  %v1324_v21 = vpop.f32.mrb[2].mxu1  ;;  %1366 = vtanh.f32 %v688_v16  ;;  %v862_v22 = vsub.f32 %v688_v16, %v846_v15  ;;  %v972_v41 = vmul.f32 %v688_v16, %v688_v16 }
 0x1c4   : > { %v703_v25 = vadd.f32 %v1324_v21, %v1582_v10  ;;  %v697_v26 = vpop.f32.mrb[3].mxu1  ;;  %v919_v28 = vmul.f32 %v1591_v17, %v896_v18  ;;  %v1609_v42 = vmul.f32 %v863_v19, %v863_v19 }
 0x1c5   : > { %v698_v29 = vadd.f32 %v1582_v10, %v697_v26  ;;  %v918_v30 = vmul.f32 %v1591_v17, %v895_v20  ;;  %v1614_v45 = vmul.f32 %v862_v22, %v862_v22 }
 0x1c6   : > { %1368 = vtanh.f32 %v703_v25  ;;  %v898_v32 = vmul.f32 2.0, %v703_v25  ;;  %v941_v33 = vsub.f32 %v1596_v23, %v919_v28  ;;  %v865_v34 = vsub.f32 %v703_v25, %v849_v24 }
 0x1c7   : > { %v897_v35 = vmul.f32 2.0, %v698_v29  ;;  %v1327_v36 = vpop.f32.mrb[4].mxu1  ;;  %1370 = vtanh.f32 %v698_v29  ;;  %v940_v37 = vsub.f32 %v1596_v23, %v918_v30  ;;  %v864_v38 = vsub.f32 %v698_v29, %v848_v27 }
 0x1c8   : > { %v1607_v39 = vadd.f32 %v1327_v36, %v1582_v10  ;;  %v707_v40 = vpop.f32.mrb[5].mxu1  ;;  %v957_v43 = vmul.f32 0.00390625, %v941_v33  ;;  %v974_v48 = vmul.f32 %v698_v29, %v698_v29  ;;  %v921_v50 = vmul.f32 %v1591_v17, %v898_v32 }
 0x1c9   : > { %v1612_v44 = vadd.f32 %v1582_v10, %v707_v40  ;;  %v956_v46 = vmul.f32 0.00390625, %v940_v37  ;;  %v920_v47 = vmul.f32 %v1591_v17, %v897_v35  ;;  %v1625_v54 = vmul.f32 %v865_v34, %v865_v34  ;;  %v851_v34 = vld [vmem:[%s1577_s30 + $0x28] sm:$0xff] }
 0x1ca   : > { %1372 = vtanh.f32 %v1607_v39  ;;  %v1618_v49 = vadd.f32 %v973_v31, %v957_v43  ;;  %v1630_v58 = vmul.f32 %v864_v38, %v864_v38  ;;  %v943_v60 = vsub.f32 %v1596_v23, %v921_v50 }
 0x1cb   : > { %1374 = vtanh.f32 %v1612_v44  ;;  %v1330_v51 = vpop.f32.mrb[6].mxu1  ;;  %v1622_v52 = vadd.f32 %v972_v41, %v956_v46  ;;  %v942_v53 = vsub.f32 %v1596_v23, %v920_v47  ;;  %v975_v5 = vmul.f32 %v703_v25, %v703_v25 }
 0x1cc   : > { %v1365_v55 = vpop.eup %1364  ;;  %v1628_v56 = vadd.f32 %v1330_v51, %v1582_v10  ;;  %v717_v57 = vpop.f32.mrb[7].mxu1  ;;  %v1005_v59 = vsub.f32 %v1618_v49, %v1609_v42  ;;  %v959_v4 = vmul.f32 0.00390625, %v943_v60  ;;  %v899_v6 = vmul.f32 2.0, %v1612_v44 }
 0x1cd   : > { %v1367_v61 = vpop.eup %1366  ;;  %v1636_v62 = vadd.f32 %v1582_v10, %v717_v57  ;;  %v783_v63 = vsub.f32 0.0, %v1365_v55  ;;  %v1004_v0 = vsub.f32 %v1622_v52, %v1614_v45  ;;  %v958_v1 = vmul.f32 0.00390625, %v942_v53 }
 0x1ce   : > { %1376 = vtanh.f32 %v1628_v56  ;;  %v782_v3 = vsub.f32 0.0, %v1367_v61  ;;  %v1649_v15 = vadd.f32 %v975_v5, %v959_v4  ;;  %v866_v16 = vsub.f32 %v1612_v44, %v850_v2 }
 0x1cf   : > { %1378 = vtanh.f32 %v1636_v62  ;;  %v1333_v7 = vpop.f32.mrb[8].mxu1  ;;  %v800_v8 = vmul.f32 1.442695, %v783_v63  ;;  %v1644_v9 = vadd.f32 %v974_v48, %v958_v1  ;;  %v900_v25 = vmul.f32 2.0, %v1607_v39 }
 0x1d0   : > { %v1369_v11 = vpop.eup %1368  ;;  %v1647_v12 = vadd.f32 %v1333_v7, %v1582_v10  ;;  %v727_v13 = vpop.f32.mrb[9].mxu1  ;;  %v798_v14 = vmul.f32 1.442695, %v782_v3  ;;  %v1007_v24 = vsub.f32 %v1649_v15, %v1625_v54  ;;  %v1662_v26 = vmul.f32 2.0, %v1628_v56 }
 0x1d1   : > { %v1371_v18 = vpop.eup %1370  ;;  %v1653_v19 = vadd.f32 %v1582_v10, %v727_v13  ;;  %1380 = vpow2.f32 %v800_v8  ;;  %v785_v20 = vsub.f32 0.0, %v1369_v11  ;;  %v1006_v21 = vsub.f32 %v1644_v9, %v1630_v58 }
 0x1d2   : > { %1382 = vtanh.f32 %v1647_v12  ;;  %v784_v22 = vsub.f32 0.0, %v1371_v18  ;;  %v922_v33 = vmul.f32 %v1591_v17, %v899_v6  ;;  %v1671_v36 = vmul.f32 2.0, %v1636_v62 }
 0x1d3   : > { %1384 = vtanh.f32 %v1653_v19  ;;  %v1336_v27 = vpop.f32.mrb[10].mxu1  ;;  %v804_v28 = vmul.f32 1.442695, %v785_v20  ;;  %v1677_v40 = vmul.f32 2.0, %v1647_v12  ;;  %v976_v48 = vmul.f32 %v1612_v44, %v1612_v44 }
 0x1d4   : > { %v1373_v29 = vpop.eup %1372  ;;  %v1666_v30 = vadd.f32 %v1336_v27, %v1582_v10  ;;  %v737_v31 = vpop.f32.mrb[11].mxu1  ;;  %1386 = vpow2.f32 %v798_v14  ;;  %v802_v32 = vmul.f32 1.442695, %v784_v22  ;;  %v944_v43 = vsub.f32 %v1596_v23, %v922_v33 }
 0x1d5   : > { %v1375_v35 = vpop.eup %1374  ;;  %v1674_v37 = vadd.f32 %v1582_v10, %v737_v31  ;;  %1388 = vpow2.f32 %v804_v28  ;;  %v787_v38 = vsub.f32 0.0, %v1373_v29  ;;  %v867_v50 = vsub.f32 %v1607_v39, %v851_v34  ;;  %v852_v34 = vld [vmem:[%s1577_s30 + $0x30] sm:$0xff] }
 0x1d6   : > { %1390 = vtanh.f32 %v1666_v30  ;;  %v786_v41 = vsub.f32 0.0, %v1375_v35  ;;  %v960_v60 = vmul.f32 0.00390625, %v944_v43  ;;  %v1689_v63 = vmul.f32 2.0, %v1653_v19 }
 0x1d7   : > { %1392 = vtanh.f32 %v1674_v37  ;;  %v1339_v46 = vpop.f32.mrb[12].mxu1  ;;  %v808_v47 = vmul.f32 1.442695, %v787_v38  ;;  %v1695_v3 = vmul.f32 %v866_v16, %v866_v16  ;;  %v1700_v6 = vmul.f32 2.0, %v1666_v30 }
 0x1d8   : > { %v1377_v51 = vpop.eup %1376  ;;  %v1686_v53 = vadd.f32 %v1339_v46, %v1582_v10  ;;  %v747_v55 = vpop.f32.mrb[13].mxu1  ;;  %1394 = vpow2.f32 %v802_v32  ;;  %v806_v57 = vmul.f32 1.442695, %v786_v41  ;;  %v1697_v4 = vadd.f32 %v976_v48, %v960_v60  ;;  %v853_v60 = vld [vmem:[%s1577_s30 + $0x38] sm:$0xff] }
 0x1d9   : > { %v1379_v61 = vpop.eup %1378  ;;  %v1692_v1 = vadd.f32 %v1582_v10, %v747_v55  ;;  %1396 = vpow2.f32 %v808_v47  ;;  %v789_v2 = vsub.f32 0.0, %v1377_v51  ;;  %v923_v11 = vmul.f32 %v1591_v17, %v900_v25 }
 0x1da   : > { %1398 = vtanh.f32 %v1686_v53  ;;  %v788_v44 = vsub.f32 0.0, %v1379_v61  ;;  %v1705_v14 = vmul.f32 2.0, %v1674_v37  ;;  %v1008_v25 = vsub.f32 %v1697_v4, %v1695_v3 }
 0x1db   : > { %v1381_v5 = vpop.eup %1380  ;;  %1400 = vtanh.f32 %v1692_v1  ;;  %v1342_v7 = vpop.f32.mrb[14].mxu1  ;;  %v812_v8 = vmul.f32 1.442695, %v789_v2  ;;  %v1716_v32 = vmul.f32 %v867_v50, %v867_v50  ;;  %v945_v33 = vsub.f32 %v1596_v23, %v923_v11 }
 0x1dc   : > { %v1383_v13 = vpop.eup %1382  ;;  %v1708_v16 = vadd.f32 %v1342_v7, %v1582_v10  ;;  %v757_v18 = vpop.f32.mrb[15].mxu1  ;;  %1402 = vpow2.f32 %v806_v57  ;;  %v810_v20 = vmul.f32 1.442695, %v788_v44  ;;  %v1721_v38 = vmul.f32 2.0, %v1686_v53 }
 0x1dd   : > { %v1385_v22 = vpop.eup %1384  ;;  %v1711_v27 = vadd.f32 %v1582_v10, %v757_v18  ;;  %1404 = vpow2.f32 %v812_v8  ;;  %v791_v28 = vsub.f32 0.0, %v1383_v13  ;;  %v1725_v46 = vmul.f32 2.0, %v1692_v1 }
 0x1de   : > { %v1387_v29 = vpop.eup %1386  ;;  %1406 = vtanh.f32 %v1708_v16  ;;  %v790_v31 = vsub.f32 0.0, %v1385_v22  ;;  %v961_v48 = vmul.f32 0.00390625, %v945_v33  ;;  %v977_v55 = vmul.f32 %v1607_v39, %v1607_v39 }
 0x1df   : > { %v1389_v35 = vpop.eup %1388  ;;  %1408 = vtanh.f32 %v1711_v27  ;;  %v830_v10 = vmul.f32 0.5, %v1387_v29  ;;  %v816_v41 = vmul.f32 1.442695, %v791_v28  ;;  %v868_v57 = vsub.f32 %v1636_v62, %v852_v34 }
 0x1e0   : > { %v1391_v43 = vpop.eup %1390  ;;  %1410 = vpow2.f32 %v810_v20  ;;  %v814_v47 = vmul.f32 1.442695, %v790_v31  ;;  %v831_v2 = vmul.f32 0.5, %v1381_v5  ;;  %v924_v7 = vmul.f32 %v1591_v17, %v1671_v36 }
 0x1e1   : > { %v1393_v50 = vpop.eup %1392  ;;  %1036 = vrot.lane.b32.xlu0 %v830_v10, %s1436_s15  ;;  %1412 = vpow2.f32 %v816_v41  ;;  %v793_v51 = vsub.f32 0.0, %v1391_v43  ;;  %v1735_v11 = vmul.f32 2.0, %v1708_v16  ;;  %v1737_v20 = vadd.f32 %v977_v55, %v961_v48  ;;  %v854_v10 = vld [vmem:[%s1577_s30 + $0x40] sm:$0xff] }
 0x1e2   : > { %v1395_v61 = vpop.eup %1394  ;;  %1414 = vpow2.f32 %v814_v47  ;;  %v792_v44 = vsub.f32 0.0, %v1393_v50  ;;  %v1740_v22 = vmul.f32 2.0, %v1711_v27  ;;  %v946_v5 = vsub.f32 %v1596_v23, %v924_v7 }
 0x1e3   : > { %v1397_v8 = vpop.eup %1396  ;;  %v832_v13 = vmul.f32 0.5, %v1395_v61  ;;  %v820_v18 = vmul.f32 1.442695, %v793_v51  ;;  %v869_v29 = vsub.f32 %v1628_v56, %v853_v60  ;;  %v1009_v33 = vsub.f32 %v1737_v20, %v1716_v32 }
 0x1e4   : > { %v1399_v39 = vpop.eup %1398  ;;  %v818_v28 = vmul.f32 1.442695, %v792_v44  ;;  %v925_v34 = vmul.f32 %v1591_v17, %v1662_v26  ;;  %v962_v47 = vmul.f32 0.00390625, %v946_v5  ;;  %v978_v48 = vmul.f32 %v1636_v62, %v1636_v62 }
 0x1e5   : > { %v1401_v31 = vpop.eup %1400  ;;  %1040 = vrot.lane.b32.xlu1 %v832_v13, %s1436_s15  ;;  %1038 = vrot.lane.b32.xlu0 %v831_v2, %s1436_s15  ;;  %1416 = vpow2.f32 %v820_v18  ;;  %v795_v36 = vsub.f32 0.0, %v1399_v39  ;;  %v833_v51 = vmul.f32 0.5, %v1389_v35  ;;  %v1753_v60 = vmul.f32 %v868_v57, %v868_v57 }
 0x1e6   : > { %v1403_v41 = vpop.eup %1402  ;;  %1418 = vpow2.f32 %v818_v28  ;;  %v794_v43 = vsub.f32 0.0, %v1401_v31  ;;  %v947_v61 = vsub.f32 %v1596_v23, %v925_v34  ;;  %v1756_v26 = vadd.f32 %v978_v48, %v962_v47  ;;  %v855_v28 = vld [vmem:[%s1577_s30 + $0x48] sm:$0xff] }
 0x1e7   : > { %v1405_v50 = vpop.eup %1404  ;;  %v834_v55 = vmul.f32 0.5, %v1403_v41  ;;  %v824_v7 = vmul.f32 1.442695, %v795_v36  ;;  %v870_v13 = vsub.f32 %v1653_v19, %v854_v10  ;;  %v979_v57 = vmul.f32 %v1628_v56, %v1628_v56 }
 0x1e8   : > { %v1407_v2 = vpop.eup %1406  ;;  %v822_v44 = vmul.f32 1.442695, %v794_v43  ;;  %v963_v35 = vmul.f32 0.00390625, %v947_v61  ;;  %v926_v39 = vmul.f32 %v1591_v17, %v1689_v63  ;;  %v835_v31 = vmul.f32 0.5, %v1397_v8 }
 0x1e9   : > { %v1409_v18 = vpop.eup %1408  ;;  %1042 = vrot.lane.b32.xlu1 %v833_v51, %s1436_s15  ;;  %1044 = vrot.lane.b32.xlu0 %v834_v55, %s1436_s15  ;;  %v797_v62 = vsub.f32 0.0, %v1407_v2  ;;  %v1010_v34 = vsub.f32 %v1756_v26, %v1753_v60  ;;  %v1768_v43 = vmul.f32 %v869_v29, %v869_v29  ;;  %v871_v8 = vsub.f32 %v1647_v12, %v855_v28  ;;  %v856_v55 = vld [vmem:[%s1577_s30 + $0x50] sm:$0xff] }
 0x1ea   : > { %v1411_v5 = vpop.eup %1410  ;;  %1420 = vpow2.f32 %v822_v44  ;;  %v796_v36 = vsub.f32 0.0, %v1409_v18  ;;  %v1770_v47 = vadd.f32 %v979_v57, %v963_v35  ;;  %v948_v56 = vsub.f32 %v1596_v23, %v926_v39  ;;  %v857_v18 = vld [vmem:[%s1577_s30 + $0x58] sm:$0xff] }
 0x1eb   : > { %v1413_v10 = vpop.eup %1412  ;;  %v836_v41 = vmul.f32 0.5, %v1411_v5  ;;  %1422 = vpow2.f32 %v824_v7  ;;  %v828_v51 = vmul.f32 1.442695, %v797_v62  ;;  %v980_v44 = vmul.f32 %v1653_v19, %v1653_v19 }
 0x1ec   : > { %v1415_v48 = vpop.eup %1414  ;;  %v826_v63 = vmul.f32 1.442695, %v796_v36  ;;  %v1011_v29 = vsub.f32 %v1770_v47, %v1768_v43  ;;  %v964_v2 = vmul.f32 0.00390625, %v948_v56  ;;  %v837_v7 = vmul.f32 0.5, %v1405_v50 }
 0x1ed   : > { %1046 = vrot.lane.b32.xlu1 %v835_v31, %s1436_s15  ;;  %1048 = vrot.lane.b32.xlu0 %v836_v41, %s1436_s15  ;;  %v838_v61 = vmul.f32 0.5, %v1415_v48  ;;  %v1782_v62 = vmul.f32 %v870_v13, %v870_v13  ;;  %v927_v35 = vmul.f32 %v1591_v17, %v1677_v40  ;;  %v839_v39 = vmul.f32 0.5, %v1413_v10  ;;  %v858_v40 = vld [vmem:[%s1577_s30 + $0x60] sm:$0xff]  ;;  %v859_v48 = vld [vmem:[%s1577_s30 + $0x68] sm:$0xff] }
 0x1ee   : > { %1424 = vpow2.f32 %v826_v63  ;;  %v1786_v28 = vadd.f32 %v980_v44, %v964_v2  ;;  %v872_v5 = vsub.f32 %v1674_v37, %v856_v55  ;;  %v928_v31 = vmul.f32 %v1591_v17, %v1705_v14 }
 0x1ef   : > { %v1417_v57 = vpop.eup %1416  ;;  %1426 = vpow2.f32 %v828_v51  ;;  %v949_v50 = vsub.f32 %v1596_v23, %v927_v35  ;;  %v873_v13 = vsub.f32 %v1666_v30, %v857_v18  ;;  %v929_v36 = vmul.f32 %v1591_v17, %v1700_v6 }
 0x1f0   : > { %v1419_v19 = vpop.eup %1418  ;;  %v1012_v41 = vsub.f32 %v1786_v28, %v1782_v62  ;;  %v1800_v56 = vmul.f32 %v871_v8, %v871_v8  ;;  %v950_v14 = vsub.f32 %v1596_v23, %v928_v31  ;;  %v981_v51 = vmul.f32 %v1647_v12, %v1647_v12 }
 0x1f1   : > { %1050 = vrot.lane.b32.xlu1 %v837_v7, %s1436_s15  ;;  %1052 = vrot.lane.b32.xlu0 %v838_v61, %s1436_s15  ;;  %v840_v10 = vmul.f32 0.5, %v1419_v19  ;;  %v965_v63 = vmul.f32 0.00390625, %v949_v50  ;;  %v982_v6 = vmul.f32 %v1674_v37, %v1674_v37  ;;  %v951_v55 = vsub.f32 %v1596_v23, %v929_v36  ;;  %v860_v19 = vld [vmem:[%s1577_s30 + $0x70] sm:$0xff] }
 0x1f2   : > { %v841_v61 = vmul.f32 0.5, %v1417_v57  ;;  %v966_v2 = vmul.f32 0.00390625, %v950_v14  ;;  %v874_v44 = vsub.f32 %v1692_v1, %v858_v40  ;;  %v930_v8 = vmul.f32 %v1591_v17, %v1725_v46 }
 0x1f3   : > { %v1812_v7 = vadd.f32 %v981_v51, %v965_v63  ;;  %v967_v35 = vmul.f32 0.00390625, %v951_v55  ;;  %v983_v31 = vmul.f32 %v1666_v30, %v1666_v30  ;;  %v875_v12 = vsub.f32 %v1686_v53, %v859_v48  ;;  %v861_v51 = vld [vmem:[%s1577_s30 + $0x78] sm:$0xff] }
 0x1f4   : > { %v1421_v18 = vpop.eup %1420  ;;  %v1820_v57 = vmul.f32 %v872_v5, %v872_v5  ;;  %v1822_v50 = vadd.f32 %v982_v6, %v966_v2  ;;  %v952_v46 = vsub.f32 %v1596_v23, %v930_v8  ;;  %v1827_v30 = vmul.f32 %v873_v13, %v873_v13 }
 0x1f5   : > { %1054 = vrot.lane.b32.xlu1 %v839_v39, %s1436_s15  ;;  %1056 = vrot.lane.b32.xlu0 %v840_v10, %s1436_s15  ;;  %v842_v37 = vmul.f32 0.5, %v1421_v18  ;;  %v1423_v36 = vpop.eup %1422  ;;  %v1013_v40 = vsub.f32 %v1812_v7, %v1800_v56  ;;  %v1829_v14 = vadd.f32 %v983_v31, %v967_v35  ;;  %v931_v39 = vmul.f32 %v1591_v17, %v1721_v38 }
 0x1f6   : > { %v1014_v10 = vsub.f32 %v1822_v50, %v1820_v57  ;;  %v968_v5 = vmul.f32 0.00390625, %v952_v46  ;;  %v984_v48 = vmul.f32 %v1692_v1, %v1692_v1  ;;  %v876_v63 = vsub.f32 %v1711_v27, %v860_v19 }
 0x1f7   : > { %v1015_v13 = vsub.f32 %v1829_v14, %v1827_v30  ;;  %v953_v55 = vsub.f32 %v1596_v23, %v931_v39  ;;  %v932_v2 = vmul.f32 %v1591_v17, %v1740_v22  ;;  %v1846_v8 = vmul.f32 %v874_v44, %v874_v44 }
 0x1f8   : > { %v1425_v6 = vpop.eup %1424  ;;  %v1848_v1 = vadd.f32 %v984_v48, %v968_v5  ;;  %v985_v18 = vmul.f32 %v1686_v53, %v1686_v53  ;;  %v877_v46 = vsub.f32 %v1708_v16, %v861_v51  ;;  %v933_v22 = vmul.f32 %v1591_v17, %v1735_v11 }
 0x1f9   : > { %1058 = vrot.lane.b32.xlu1 %v841_v61, %s1436_s15  ;;  %1060 = vrot.lane.b32.xlu0 %v842_v37, %s1436_s15  ;;  %v844_v38 = vmul.f32 0.5, %v1425_v6  ;;  %v1427_v35 = vpop.eup %1426  ;;  %v969_v31 = vmul.f32 0.00390625, %v953_v55  ;;  %v954_v19 = vsub.f32 %v1596_v23, %v932_v2  ;;  %v843_v61 = vmul.f32 0.5, %v1423_v36 }
 0x1fa   : > { %v1016_v37 = vsub.f32 %v1848_v1, %v1846_v8  ;;  %v1858_v44 = vmul.f32 %v875_v12, %v875_v12  ;;  %v986_v53 = vmul.f32 %v1711_v27, %v1711_v27  ;;  %v955_v48 = vsub.f32 %v1596_v23, %v933_v22 }
 0x1fb   : > { %v1860_v39 = vadd.f32 %v985_v18, %v969_v31  ;;  %v970_v5 = vmul.f32 0.00390625, %v954_v19  ;;  %v1867_v51 = vmul.f32 %v876_v63, %v876_v63  ;;  %v987_v36 = vmul.f32 %v1708_v16, %v1708_v16 }
 0x1fc   : > { %v971_v12 = vmul.f32 0.00390625, %v955_v48  ;;  %v845_v6 = vmul.f32 0.5, %v1427_v35  ;;  %v1877_v23 = vmul.f32 %v877_v46, %v877_v46 }
 0x1fd   : > { %1062 = vrot.lane.b32.xlu1 %v843_v61, %s1436_s15  ;;  %1064 = vrot.lane.b32.xlu0 %v844_v38, %s1436_s15  ;;  %v1017_v17 = vsub.f32 %v1860_v39, %v1858_v44  ;;  %v1871_v11 = vadd.f32 %v986_v53, %v970_v5 }
 0x1fe   : > { %v1879_v55 = vadd.f32 %v987_v36, %v971_v12 }
 0x1ff   : > { %v1018_v27 = vsub.f32 %v1871_v11, %v1867_v51 }
 0x200   : > { %v1019_v63 = vsub.f32 %v1879_v55, %v1877_v23 }
 0x201   : > { %1066 = vrot.lane.b32.xlu1 %v845_v6, %s1436_s15 }
 0x253   : > { %v1037_v2 = vpop.permute.xlu0 %1036 }
 0x254   : > { %v1084_v38 = vmul.f32 %v1037_v2, %v1004_v0 }
 0x256   : > { %v1100_v19 = vsel %vm351_vm0, %v1084_v38, 0.0 }
 0x257   : > { %v1041_v18 = vpop.permute.xlu1 %1040  ;;  %v1039_v16 = vpop.permute.xlu0 %1038 }
 0x258   : > { %v1086_v35 = vmul.f32 %v1041_v18, %v1006_v21  ;;  %v1085_v31 = vmul.f32 %v1039_v16, %v1005_v59 }
 0x25a   : > { %v1101_v46 = vsel %vm351_vm0, %v1085_v31, 0.0  ;;  %v1103_v45 = vsel %vm351_vm0, %v1086_v35, 0.0 }
 0x25b   : > { %v1102_v22 = vadd.f32 %v1101_v46, %v1100_v19  ;;  %v1043_v61 = vpop.permute.xlu1 %1042  ;;  %v1045_v44 = vpop.permute.xlu0 %1044 }
 0x25c   : > { %v1087_v52 = vmul.f32 %v1043_v61, %v1007_v24  ;;  %v1088_v58 = vmul.f32 %v1045_v44, %v1008_v25 }
 0x25d   : > { %v1104_v0 = vadd.f32 %v1103_v45, %v1102_v22 }
 0x25e   : > { %v1105_v42 = vsel %vm351_vm0, %v1087_v52, 0.0  ;;  %v1107_v21 = vsel %vm351_vm0, %v1088_v58, 0.0 }
 0x25f   : > { %v1106_v49 = vadd.f32 %v1105_v42, %v1104_v0  ;;  %v1047_v59 = vpop.permute.xlu1 %1046  ;;  %v1049_v9 = vpop.permute.xlu0 %1048 }
 0x260   : > { %v1089_v39 = vmul.f32 %v1047_v59, %v1009_v33  ;;  %v1090_v54 = vmul.f32 %v1049_v9, %v1010_v34 }
 0x261   : > { %v1108_v15 = vadd.f32 %v1107_v21, %v1106_v49 }
 0x262   : > { %v1109_v24 = vsel %vm351_vm0, %v1089_v39, 0.0  ;;  %v1111_v5 = vsel %vm351_vm0, %v1090_v54, 0.0 }
 0x263   : > { %v1110_v3 = vadd.f32 %v1109_v24, %v1108_v15  ;;  %v1051_v4 = vpop.permute.xlu1 %1050  ;;  %v1053_v25 = vpop.permute.xlu0 %1052 }
 0x264   : > { %v1091_v53 = vmul.f32 %v1051_v4, %v1011_v29  ;;  %v1092_v32 = vmul.f32 %v1053_v25, %v1012_v41 }
 0x265   : > { %v1112_v20 = vadd.f32 %v1111_v5, %v1110_v3 }
 0x266   : > { %v1113_v33 = vsel %vm351_vm0, %v1091_v53, 0.0  ;;  %v1115_v48 = vsel %vm351_vm0, %v1092_v32, 0.0 }
 0x267   : > { %v1114_v60 = vadd.f32 %v1113_v33, %v1112_v20  ;;  %v1055_v26 = vpop.permute.xlu1 %1054  ;;  %v1057_v34 = vpop.permute.xlu0 %1056 }
 0x268   : > { %v1093_v51 = vmul.f32 %v1055_v26, %v1013_v40  ;;  %v1094_v43 = vmul.f32 %v1057_v34, %v1014_v10 }
 0x269   : > { %v1116_v47 = vadd.f32 %v1115_v48, %v1114_v60 }
 0x26a   : > { %v1117_v29 = vsel %vm351_vm0, %v1093_v51, 0.0  ;;  %v1119_v11 = vsel %vm351_vm0, %v1094_v43, 0.0 }
 0x26b   : > { %v1118_v62 = vadd.f32 %v1117_v29, %v1116_v47  ;;  %v1059_v28 = vpop.permute.xlu1 %1058  ;;  %v1061_v41 = vpop.permute.xlu0 %1060 }
 0x26c   : > { %v1095_v12 = vmul.f32 %v1059_v28, %v1015_v13  ;;  %v1096_v56 = vmul.f32 %v1061_v41, %v1016_v37 }
 0x26d   : > { %v1120_v7 = vadd.f32 %v1119_v11, %v1118_v62 }
 0x26e   : > { %v1121_v57 = vsel %vm351_vm0, %v1095_v12, 0.0  ;;  %v1123_v36 = vsel %vm351_vm0, %v1096_v56, 0.0 }
 0x26f   : > { %v1122_v50 = vadd.f32 %v1121_v57, %v1120_v7  ;;  %v1063_v40 = vpop.permute.xlu1 %1062  ;;  %v1065_v10 = vpop.permute.xlu0 %1064 }
 0x270   : > { %v1097_v6 = vmul.f32 %v1063_v40, %v1017_v17  ;;  %v1098_v23 = vmul.f32 %v1065_v10, %v1018_v27 }
 0x271   : > { %v1124_v55 = vadd.f32 %v1123_v36, %v1122_v50 }
 0x272   : > { %v1125_v30 = vsel %vm351_vm0, %v1097_v6, 0.0  ;;  %v1127_v8 = vsel %vm351_vm0, %v1098_v23, 0.0 }
 0x273   : > { %v1126_v14 = vadd.f32 %v1125_v30, %v1124_v55  ;;  %v1067_v13 = vpop.permute.xlu1 %1066 }
 0x274   : > { %v1099_v1 = vmul.f32 %v1067_v13, %v1019_v63 }
 0x275   : > { %v1128_v37 = vadd.f32 %v1127_v8, %v1126_v14 }
 0x276   : > { %v1129_v2 = vsel %vm351_vm0, %v1099_v1, 0.0 }
 0x277   : > { %v1130_v38 = vadd.f32 %v1129_v2, %v1128_v37 }
 0x279   : > { %v1131_v18 = vrot.slane %v1130_v38, 4 }
 0x27b   : > { %v1132_v16 = vadd.f32 %v1131_v18, %v1130_v38 }
 0x27d   : > { %v1133_v35 = vrot.slane %v1132_v16, 2 }
 0x27f   : > { %v1134_v31 = vadd.f32 %v1133_v35, %v1132_v16 }
 0x281   : > { %v1135_v17 = vrot.slane %v1134_v31, 1 }
 0x283   : > { %v1136_v27 = vadd.f32 %v1135_v17, %v1134_v31 }
 0x285   : > { %1138 = vst.msk [vmem:[%s325_s18] sm:$0x1] %vm1137_vm2, %v1136_v27 }
 0x286 PF: > { %s18_s27 = sadd.s32 1, %s1434_s27  }
 0x287   : > { %p15_p5 = scmp.ge.s32.totalorder %s18_s27, 4  }
 0x289   :  { %17 = sbr.rel (!%p15_p5) target bundleno = 1 (0x1), region = 85 }

</bundles_post_ra>
